<compile_context>
chip_gen: v6e
topology: v6e:2x2x1
jax: 0.10.0
libtpu: 0.0.40
codegen_flags: <defaults>
</compile_context>

<pallas_src>
import functools
import math

import jax
import jax.numpy as jnp
from jax import lax
from jax.experimental import pallas as pl
from jax.experimental.pallas import tpu as pltpu


# Raises v5e's 16 MiB scoped default; <= physical / default everywhere else.
_VMEM_LIMIT = 32 * 1024 * 1024


# ----------------------------- kernel helpers ------------------------------

def _layernorm(x, g, b, eps=1e-5):
    mu = jnp.mean(x, axis=-1, keepdims=True)
    var = jnp.mean((x - mu) ** 2, axis=-1, keepdims=True)
    return (x - mu) * lax.rsqrt(var + eps) * g + b


# --------------------------- decoder block kernel ---------------------------
# One grid step processes one batch element: full (T, D) slab in VMEM.
# LN1 -> fused QKV -> per-head causal softmax attention with the output
# projection fused into the head loop (lane-dense (T, D) f32 accumulator)
# -> residual -> LN2 -> FF(relu) -> residual.
def decoder_block_kernel(x_ref, mask_ref, ln1g, ln1b, wqkv, bqkv, wo, bo,
                         ln2g, ln2b, w1, b1, w2, b2, o_ref, *, n_heads):
    x = x_ref[0]                                    # (T, D) float32
    T, D = x.shape
    dk = D // n_heads
    scale = 1.0 / math.sqrt(dk)
    bf16 = jnp.bfloat16

    xn = _layernorm(x, ln1g[...], ln1b[...])        # pre-norm, f32

    # Fused, lane-dense QKV projection: (T, D) @ (D, 3D)  [bf16 MXU, f32 acc].
    qkv = jnp.dot(xn.astype(bf16), wqkv[...],
                  preferred_element_type=jnp.float32) + bqkv[...]

    mask_bias = mask_ref[...]                       # precomputed additive causal bias
    wo_full = wo[...]                               # (D, D) bf16, read once

    # Per-head attention; out-projection fused so every store stays lane-dense.
    # TODO(synk): fori_loop / grid axis over heads + 128-aligned dk + flash
    # query/KV tiling at production sizes (see header).
    acc = jnp.zeros((T, D), jnp.float32)
    for h in range(n_heads):                        # n_heads is small & static
        q = qkv[:, h * dk:(h + 1) * dk].astype(bf16)
        k = qkv[:, D + h * dk:D + (h + 1) * dk].astype(bf16)
        v = qkv[:, 2 * D + h * dk:2 * D + (h + 1) * dk].astype(bf16)
        s = lax.dot_general(q, k, (((1,), (1,)), ((), ())),
                            preferred_element_type=jnp.float32) * scale
        s = s + mask_bias
        s = s - jnp.max(s, axis=-1, keepdims=True)
        p = jnp.exp(s)
        p = p * pl.reciprocal(jnp.sum(p, axis=-1, keepdims=True), approx=True)
        pv = jnp.dot(p.astype(bf16), v, preferred_element_type=jnp.float32)
        acc = acc + jnp.dot(pv.astype(bf16), wo_full[h * dk:(h + 1) * dk, :],
                            preferred_element_type=jnp.float32)

    x = x + acc + bo[...]                           # residual 1 (+ out-proj bias)

    xn2 = _layernorm(x, ln2g[...], ln2b[...])
    h1 = jnp.maximum(
        jnp.dot(xn2.astype(bf16), w1[...],
                preferred_element_type=jnp.float32) + b1[...], 0.0)
    ff = jnp.dot(h1.astype(bf16), w2[...],
                 preferred_element_type=jnp.float32) + b2[...]
    o_ref[0] = x + ff                               # residual 2


# --------------------------- final LayerNorm kernel --------------------------
# Runs ONCE over the flattened (B*T, D) slab (not once per vocab tile) and
# emits bf16, so the LM head is a pure streaming matmul.
def final_ln_kernel(x_ref, g_ref, b_ref, o_ref):
    o_ref[...] = _layernorm(x_ref[...], g_ref[...], b_ref[...]).astype(o_ref.dtype)


# --------------------------------- LM head ----------------------------------
# Grid is vocab tiles only; the (B*T, D) bf16 activations are grid-invariant
# (Buffered(1)) so each (D, tile_v) weight tile streams from HBM exactly once.
def lm_head_kernel(xn_ref, wt_ref, o_ref):
    o_ref[...] = jnp.dot(xn_ref[...], wt_ref[...],
                         preferred_element_type=jnp.float32).astype(o_ref.dtype)


# ------------------------------ pallas wrappers ------------------------------

_BLOCK_PARAM_ORDER = ("ln1_g", "ln1_b", "wqkv", "bqkv", "wo", "bo",
                      "ln2_g", "ln2_b", "w1", "b1", "w2", "b2")
_MATMUL_WEIGHTS = ("wqkv", "wo", "w1", "w2")


def _const_spec(arr):
    """Grid-invariant operand: constant index map + single-buffered."""
    zeros = (0,) * arr.ndim
    return pl.BlockSpec(arr.shape, lambda *_: zeros,
                        pipeline_mode=pl.Buffered(1))


def run_decoder_block(x, mask_bias, p, *, n_heads):
    B, T, D = x.shape
    weights = [p[k] for k in _BLOCK_PARAM_ORDER]
    in_specs = [pl.BlockSpec((1, T, D), lambda b: (b, 0, 0)),
                _const_spec(mask_bias)]
    in_specs += [_const_spec(w) for w in weights]
    kernel = functools.partial(decoder_block_kernel, n_heads=n_heads)
    return pl.pallas_call(
        kernel,
        out_shape=jax.ShapeDtypeStruct((B, T, D), jnp.float32),
        grid=(B,),
        in_specs=in_specs,
        out_specs=pl.BlockSpec((1, T, D), lambda b: (b, 0, 0)),
        compiler_params=pltpu.CompilerParams(
            dimension_semantics=("parallel",),
            vmem_limit_bytes=_VMEM_LIMIT),
    )(x, mask_bias, *weights)


def run_final_ln(x_flat, g, b):
    # TODO(synk): row-tile for very large B*T; whole-slab is fine at demo sizes.
    N, D = x_flat.shape
    return pl.pallas_call(
        final_ln_kernel,
        out_shape=jax.ShapeDtypeStruct((N, D), jnp.bfloat16),
    )(x_flat, g, b)


def run_lm_head(xn_flat, w_t, *, tile_v=2048):
    # tile_v: ~2048 for v7x (64 MiB VMEM); can be raised to 4096-8192 on
    # v5e/v6e (128 MiB VMEM) to amortize per-grid-step overhead.
    N, D = xn_flat.shape
    V = w_t.shape[1]
    tile_v = min(tile_v, V)
    grid = (pl.cdiv(V, tile_v),)
    return pl.pallas_call(
        lm_head_kernel,
        out_shape=jax.ShapeDtypeStruct((N, V), jnp.bfloat16),
        grid=grid,
        in_specs=[pl.BlockSpec((N, D), lambda v: (0, 0),
                               pipeline_mode=pl.Buffered(1)),
                  pl.BlockSpec((D, tile_v), lambda v: (0, v))],
        out_specs=pl.BlockSpec((N, tile_v), lambda v: (0, v)),
        compiler_params=pltpu.CompilerParams(
            dimension_semantics=("parallel",),
            vmem_limit_bytes=_VMEM_LIMIT),
    )(xn_flat, w_t)


def prepare_block_params(blocks):
    """Cast matmul weights to bf16 once (halves weight DMA traffic)."""
    prepared = []
    for p in blocks:
        q = dict(p)
        for k in _MATMUL_WEIGHTS:
            q[k] = p[k].astype(jnp.bfloat16)
        prepared.append(q)
    return prepared


def decoder_forward(tokens, tok_emb, pos_emb, blocks_dev, lnf_g, lnf_b,
                    head_w, *, n_heads):
    B, T = tokens.shape
    D = tok_emb.shape[1]
    # Embedding gather + positional add: glue in plain JAX.
    x = tok_emb[tokens] + pos_emb[:T][None]
    # Additive causal bias computed once per forward (not per layer/step).
    causal = jnp.tril(jnp.ones((T, T), dtype=bool))
    mask_bias = jnp.where(causal, 0.0, -1e30).astype(jnp.float32)
    for blk in blocks_dev:
        # TODO(synk): carry the residual stream in bf16 between blocks once
        # tolerances are re-validated (halves inter-layer HBM traffic).
        x = run_decoder_block(x, mask_bias, blk, n_heads=n_heads)
    # Final LayerNorm once, emitting a bf16 slab for the head matmul.
    xn = run_final_ln(x.reshape(B * T, D), lnf_g, lnf_b)
    # Weight-tied head (bias zeroed in reference); head_w is (D, V) bf16.
    logits = run_lm_head(xn, head_w)
    return logits.reshape(B, T, -1)


# ---------------------------- deterministic init ----------------------------

def init_params(key, vocab, d_model, context, n_blocks, n_heads, d_ff):
    std_lin = 0.02
    std_res = 0.02 * (2 * n_blocks) ** (-0.5)       # ResidualScaledLinear init
    keys = jax.random.split(key, 2 + n_blocks)
    tok_emb = 0.02 * jax.random.normal(keys[0], (vocab, d_model), jnp.float32)
    pos_emb = 0.01 * jax.random.normal(keys[1], (context, d_model), jnp.float32)
    blocks = []
    for i in range(n_blocks):
        ks = jax.random.split(keys[2 + i], 4)
        blocks.append(dict(
            ln1_g=jnp.ones((1, d_model), jnp.float32),
            ln1_b=jnp.zeros((1, d_model), jnp.float32),
            # fused per-head Q/K/V weights, layout [Q heads | K heads | V heads]
            wqkv=std_lin * jax.random.normal(ks[0], (d_model, 3 * d_model),
                                             jnp.float32),
            bqkv=jnp.zeros((1, 3 * d_model), jnp.float32),
            wo=std_res * jax.random.normal(ks[1], (d_model, d_model), jnp.float32),
            bo=jnp.zeros((1, d_model), jnp.float32),
            ln2_g=jnp.ones((1, d_model), jnp.float32),
            ln2_b=jnp.zeros((1, d_model), jnp.float32),
            w1=std_lin * jax.random.normal(ks[2], (d_model, d_ff), jnp.float32),
            b1=jnp.zeros((1, d_ff), jnp.float32),
            w2=std_res * jax.random.normal(ks[3], (d_ff, d_model), jnp.float32),
            b2=jnp.zeros((1, d_model), jnp.float32),
        ))
    lnf_g = jnp.ones((1, d_model), jnp.float32)
    lnf_b = jnp.zeros((1, d_model), jnp.float32)
    return tok_emb, pos_emb, blocks, lnf_g, lnf_b


# ----------------------------- pure-JAX reference ----------------------------
# Mirrors the PyTorch module (per-head attention, f32 throughout).

def reference_forward(tokens, tok_emb, pos_emb, blocks, lnf_g, lnf_b, n_heads):
    _, T = tokens.shape
    D = tok_emb.shape[1]
    dk = D // n_heads
    x = tok_emb[tokens] + pos_emb[:T][None]
    causal = jnp.tril(jnp.ones((T, T), bool))
    for p in blocks:
        xn = _layernorm(x, p["ln1_g"][0], p["ln1_b"][0])
        qkv = xn @ p["wqkv"] + p["bqkv"][0]
        heads = []
        for h in range(n_heads):
            q = qkv[..., h * dk:(h + 1) * dk]
            k = qkv[..., D + h * dk:D + (h + 1) * dk]
            v = qkv[..., 2 * D + h * dk:2 * D + (h + 1) * dk]
            s = jnp.einsum("btk,bsk->bts", q, k) / math.sqrt(dk)
            s = jnp.where(causal, s, -jnp.inf)
            heads.append(jax.nn.softmax(s, axis=-1) @ v)
        attn = jnp.concatenate(heads, axis=-1) @ p["wo"] + p["bo"][0]
        x = x + attn
        xn2 = _layernorm(x, p["ln2_g"][0], p["ln2_b"][0])
        x = x + jnp.maximum(xn2 @ p["w1"] + p["b1"][0], 0.0) @ p["w2"] + p["b2"][0]
    xf = _layernorm(x, lnf_g[0], lnf_b[0])
    return xf @ tok_emb.T


# ----------------------------------- main ------------------------------------

if __name__ == "__main__":
    VOCAB, D_MODEL, CONTEXT = 64, 32, 16
    N_BLOCKS, N_HEADS, D_FF = 2, 4, 64
    B, T = 2, 8

    key = jax.random.PRNGKey(0)
    k_params, k_tok = jax.random.split(key)
    tok_emb, pos_emb, blocks, lnf_g, lnf_b = init_params(
        k_params, VOCAB, D_MODEL, CONTEXT, N_BLOCKS, N_HEADS, D_FF)
    tokens = jax.random.randint(k_tok, (B, T), 0, VOCAB, dtype=jnp.int32)

    # One-time prep outside the forward path: bf16 matmul weights and the
    # pre-transposed tied LM-head weight.
    # TODO(synk): on v7x the tied head weight could be fp8 with per-channel
    # scales; kept bf16 here for numerics.
    blocks_dev = prepare_block_params(blocks)
    head_w = jnp.asarray(tok_emb.T, dtype=jnp.bfloat16)     # (D, V)

    logits = decoder_forward(tokens, tok_emb, pos_emb, blocks_dev,
                             lnf_g, lnf_b, head_w, n_heads=N_HEADS)
    logits = jax.block_until_ready(logits)

    ref = reference_forward(tokens, tok_emb, pos_emb, blocks, lnf_g, lnf_b,
                            N_HEADS)
    assert logits.shape == (B, T, VOCAB), logits.shape
    logits_f32 = logits.astype(jnp.float32)
    max_err = float(jnp.max(jnp.abs(logits_f32 - ref)))
    # Kernel uses bf16 MXU inputs (f32 accumulation), approx reciprocal and
    # bf16 logits, so compare against the f32 reference with a bf16-appropriate
    # tolerance.
    assert jnp.allclose(logits_f32, ref, atol=2e-2, rtol=2e-2), max_err

    print("KERNEL_OK")
</pallas_src>

<mosaic_0001>
module attributes {stable_mosaic.version = 11 : i64} {
  func.func @decoder_block_kernel(%arg0: i32, %arg1: memref<1x8x32xf32, #tpu.memory_space<vmem>>, %arg2: memref<8x8xf32, #tpu.memory_space<vmem>>, %arg3: memref<1x32xf32, #tpu.memory_space<vmem>>, %arg4: memref<1x32xf32, #tpu.memory_space<vmem>>, %arg5: memref<32x96xbf16, #tpu.memory_space<vmem>>, %arg6: memref<1x96xf32, #tpu.memory_space<vmem>>, %arg7: memref<32x32xbf16, #tpu.memory_space<vmem>>, %arg8: memref<1x32xf32, #tpu.memory_space<vmem>>, %arg9: memref<1x32xf32, #tpu.memory_space<vmem>>, %arg10: memref<1x32xf32, #tpu.memory_space<vmem>>, %arg11: memref<32x64xbf16, #tpu.memory_space<vmem>>, %arg12: memref<1x64xf32, #tpu.memory_space<vmem>>, %arg13: memref<64x32xbf16, #tpu.memory_space<vmem>>, %arg14: memref<1x32xf32, #tpu.memory_space<vmem>>, %arg15: memref<1x8x32xf32, #tpu.memory_space<vmem>>) attributes {dimension_semantics = [#tpu.dimension_semantics<parallel>], iteration_bounds = array<i64: 2>, scalar_prefetch = 0 : i64, scratch_operands = 0 : i64, tpu.core_type = #tpu.core_type<tc>, window_params = [{transform_indices = @transform_0, window_bounds = array<i64: 1, 8, 32>}, {pipeline_mode = #tpu.pipeline_mode<synchronous>, transform_indices = @transform_1, window_bounds = array<i64: 8, 8>}, {pipeline_mode = #tpu.pipeline_mode<synchronous>, transform_indices = @transform_2, window_bounds = array<i64: 1, 32>}, {pipeline_mode = #tpu.pipeline_mode<synchronous>, transform_indices = @transform_3, window_bounds = array<i64: 1, 32>}, {pipeline_mode = #tpu.pipeline_mode<synchronous>, transform_indices = @transform_4, window_bounds = array<i64: 32, 96>}, {pipeline_mode = #tpu.pipeline_mode<synchronous>, transform_indices = @transform_5, window_bounds = array<i64: 1, 96>}, {pipeline_mode = #tpu.pipeline_mode<synchronous>, transform_indices = @transform_6, window_bounds = array<i64: 32, 32>}, {pipeline_mode = #tpu.pipeline_mode<synchronous>, transform_indices = @transform_7, window_bounds = array<i64: 1, 32>}, {pipeline_mode = #tpu.pipeline_mode<synchronous>, transform_indices = @transform_8, window_bounds = array<i64: 1, 32>}, {pipeline_mode = #tpu.pipeline_mode<synchronous>, transform_indices = @transform_9, window_bounds = array<i64: 1, 32>}, {pipeline_mode = #tpu.pipeline_mode<synchronous>, transform_indices = @transform_10, window_bounds = array<i64: 32, 64>}, {pipeline_mode = #tpu.pipeline_mode<synchronous>, transform_indices = @transform_11, window_bounds = array<i64: 1, 64>}, {pipeline_mode = #tpu.pipeline_mode<synchronous>, transform_indices = @transform_12, window_bounds = array<i64: 64, 32>}, {pipeline_mode = #tpu.pipeline_mode<synchronous>, transform_indices = @transform_13, window_bounds = array<i64: 1, 32>}, {transform_indices = @transform_14, window_bounds = array<i64: 1, 8, 32>}]} {
    %c0 = arith.constant 0 : index
    %c0_0 = arith.constant 0 : index
    %c0_1 = arith.constant 0 : index
    %0 = vector.load %arg1[%c0, %c0_0, %c0_1] : memref<1x8x32xf32, #tpu.memory_space<vmem>>, vector<1x8x32xf32>
    %1 = vector.shape_cast %0 : vector<1x8x32xf32> to vector<8x32xf32>
    %c0_2 = arith.constant 0 : index
    %c0_3 = arith.constant 0 : index
    %2 = vector.load %arg3[%c0_2, %c0_3] : memref<1x32xf32, #tpu.memory_space<vmem>>, vector<1x32xf32>
    %c0_4 = arith.constant 0 : index
    %c0_5 = arith.constant 0 : index
    %3 = vector.load %arg4[%c0_4, %c0_5] : memref<1x32xf32, #tpu.memory_space<vmem>>, vector<1x32xf32>
    %cst = arith.constant dense<0.000000e+00> : vector<8xf32>
    %4 = vector.multi_reduction <add>, %1, %cst [1] : vector<8x32xf32> to vector<8xf32>
    %5 = vector.shape_cast %4 : vector<8xf32> to vector<8x1xf32>
    %cst_6 = arith.constant 3.200000e+01 : f32
    %6 = vector.broadcast %cst_6 : f32 to vector<8x1xf32>
    %7 = arith.divf %5, %6 : vector<8x1xf32>
    %8 = vector.broadcast %7 : vector<8x1xf32> to vector<8x32xf32>
    %9 = arith.subf %1, %8 : vector<8x32xf32>
    %10 = arith.mulf %9, %9 : vector<8x32xf32>
    %cst_7 = arith.constant dense<0.000000e+00> : vector<8xf32>
    %11 = vector.multi_reduction <add>, %10, %cst_7 [1] : vector<8x32xf32> to vector<8xf32>
    %12 = vector.shape_cast %11 : vector<8xf32> to vector<8x1xf32>
    %cst_8 = arith.constant 3.200000e+01 : f32
    %13 = vector.broadcast %cst_8 : f32 to vector<8x1xf32>
    %14 = arith.divf %12, %13 : vector<8x1xf32>
    %15 = vector.broadcast %7 : vector<8x1xf32> to vector<8x32xf32>
    %16 = arith.subf %1, %15 : vector<8x32xf32>
    %cst_9 = arith.constant 9.99999974E-6 : f32
    %17 = vector.broadcast %cst_9 : f32 to vector<8x1xf32>
    %18 = arith.addf %14, %17 : vector<8x1xf32>
    %19 = math.rsqrt %18 : vector<8x1xf32>
    %20 = vector.broadcast %19 : vector<8x1xf32> to vector<8x32xf32>
    %21 = arith.mulf %16, %20 : vector<8x32xf32>
    %22 = vector.broadcast %2 : vector<1x32xf32> to vector<8x32xf32>
    %23 = arith.mulf %21, %22 : vector<8x32xf32>
    %24 = vector.broadcast %3 : vector<1x32xf32> to vector<8x32xf32>
    %25 = arith.addf %23, %24 : vector<8x32xf32>
    %26 = arith.truncf %25 : vector<8x32xf32> to vector<8x32xbf16>
    %c0_10 = arith.constant 0 : index
    %c0_11 = arith.constant 0 : index
    %27 = vector.load %arg5[%c0_10, %c0_11] : memref<32x96xbf16, #tpu.memory_space<vmem>>, vector<32x96xbf16>
    %cst_12 = arith.constant dense<0.000000e+00> : vector<8x96xf32>
    %28 = tpu.matmul %26, %27, %cst_12 {dimension_numbers = #tpu.dot_dimension_numbers<[1], [0], [0], [1], [0, 0, 1, 1], [], []>} : vector<8x32xbf16>, vector<32x96xbf16>, vector<8x96xf32> -> vector<8x96xf32>
    %c0_13 = arith.constant 0 : index
    %c0_14 = arith.constant 0 : index
    %29 = vector.load %arg6[%c0_13, %c0_14] : memref<1x96xf32, #tpu.memory_space<vmem>>, vector<1x96xf32>
    %30 = vector.broadcast %29 : vector<1x96xf32> to vector<8x96xf32>
    %31 = arith.addf %28, %30 : vector<8x96xf32>
    %c0_15 = arith.constant 0 : index
    %c0_16 = arith.constant 0 : index
    %32 = vector.load %arg2[%c0_15, %c0_16] : memref<8x8xf32, #tpu.memory_space<vmem>>, vector<8x8xf32>
    %c0_17 = arith.constant 0 : index
    %c0_18 = arith.constant 0 : index
    %33 = vector.load %arg7[%c0_17, %c0_18] : memref<32x32xbf16, #tpu.memory_space<vmem>>, vector<32x32xbf16>
    %cst_19 = arith.constant 0.000000e+00 : f32
    %34 = vector.broadcast %cst_19 : f32 to vector<8x32xf32>
    %35 = vector.extract_strided_slice %31 {offsets = [0, 0], sizes = [8, 8], strides = [1, 1]} : vector<8x96xf32> to vector<8x8xf32>
    %36 = arith.truncf %35 : vector<8x8xf32> to vector<8x8xbf16>
    %37 = vector.extract_strided_slice %31 {offsets = [0, 32], sizes = [8, 8], strides = [1, 1]} : vector<8x96xf32> to vector<8x8xf32>
    %38 = arith.truncf %37 : vector<8x8xf32> to vector<8x8xbf16>
    %39 = vector.extract_strided_slice %31 {offsets = [0, 64], sizes = [8, 8], strides = [1, 1]} : vector<8x96xf32> to vector<8x8xf32>
    %40 = arith.truncf %39 : vector<8x8xf32> to vector<8x8xbf16>
    %cst_20 = arith.constant dense<0.000000e+00> : vector<8x8xf32>
    %41 = tpu.matmul %36, %38, %cst_20 {dimension_numbers = #tpu.dot_dimension_numbers<[1], [1], [0], [0], [0, 0, 1, 0], [], []>} : vector<8x8xbf16>, vector<8x8xbf16>, vector<8x8xf32> -> vector<8x8xf32>
    %cst_21 = arith.constant 0.353553385 : f32
    %42 = vector.broadcast %cst_21 : f32 to vector<8x8xf32>
    %43 = arith.mulf %41, %42 : vector<8x8xf32>
    %44 = arith.addf %43, %32 : vector<8x8xf32>
    %cst_22 = arith.constant dense<0xFF800000> : vector<8xf32>
    %45 = vector.multi_reduction <maximumf>, %44, %cst_22 [1] : vector<8x8xf32> to vector<8xf32>
    %46 = vector.shape_cast %45 : vector<8xf32> to vector<8x1xf32>
    %47 = vector.broadcast %46 : vector<8x1xf32> to vector<8x8xf32>
    %48 = arith.subf %44, %47 : vector<8x8xf32>
    %49 = math.exp %48 : vector<8x8xf32>
    %cst_23 = arith.constant dense<0.000000e+00> : vector<8xf32>
    %50 = vector.multi_reduction <add>, %49, %cst_23 [1] : vector<8x8xf32> to vector<8xf32>
    %51 = vector.shape_cast %50 : vector<8xf32> to vector<8x1xf32>
    %52 = tpu.reciprocal %51 {approx = true} : vector<8x1xf32> -> vector<8x1xf32>
    %53 = vector.broadcast %52 : vector<8x1xf32> to vector<8x8xf32>
    %54 = arith.mulf %49, %53 : vector<8x8xf32>
    %55 = arith.truncf %54 : vector<8x8xf32> to vector<8x8xbf16>
    %cst_24 = arith.constant dense<0.000000e+00> : vector<8x8xf32>
    %56 = tpu.matmul %55, %40, %cst_24 {dimension_numbers = #tpu.dot_dimension_numbers<[1], [0], [0], [1], [0, 0, 1, 1], [], []>} : vector<8x8xbf16>, vector<8x8xbf16>, vector<8x8xf32> -> vector<8x8xf32>
    %57 = arith.truncf %56 : vector<8x8xf32> to vector<8x8xbf16>
    %58 = vector.extract_strided_slice %33 {offsets = [0, 0], sizes = [8, 32], strides = [1, 1]} : vector<32x32xbf16> to vector<8x32xbf16>
    %cst_25 = arith.constant dense<0.000000e+00> : vector<8x32xf32>
    %59 = tpu.matmul %57, %58, %cst_25 {dimension_numbers = #tpu.dot_dimension_numbers<[1], [0], [0], [1], [0, 0, 1, 1], [], []>} : vector<8x8xbf16>, vector<8x32xbf16>, vector<8x32xf32> -> vector<8x32xf32>
    %60 = arith.addf %34, %59 : vector<8x32xf32>
    %61 = vector.extract_strided_slice %31 {offsets = [0, 8], sizes = [8, 8], strides = [1, 1]} : vector<8x96xf32> to vector<8x8xf32>
    %62 = arith.truncf %61 : vector<8x8xf32> to vector<8x8xbf16>
    %63 = vector.extract_strided_slice %31 {offsets = [0, 40], sizes = [8, 8], strides = [1, 1]} : vector<8x96xf32> to vector<8x8xf32>
    %64 = arith.truncf %63 : vector<8x8xf32> to vector<8x8xbf16>
    %65 = vector.extract_strided_slice %31 {offsets = [0, 72], sizes = [8, 8], strides = [1, 1]} : vector<8x96xf32> to vector<8x8xf32>
    %66 = arith.truncf %65 : vector<8x8xf32> to vector<8x8xbf16>
    %cst_26 = arith.constant dense<0.000000e+00> : vector<8x8xf32>
    %67 = tpu.matmul %62, %64, %cst_26 {dimension_numbers = #tpu.dot_dimension_numbers<[1], [1], [0], [0], [0, 0, 1, 0], [], []>} : vector<8x8xbf16>, vector<8x8xbf16>, vector<8x8xf32> -> vector<8x8xf32>
    %cst_27 = arith.constant 0.353553385 : f32
    %68 = vector.broadcast %cst_27 : f32 to vector<8x8xf32>
    %69 = arith.mulf %67, %68 : vector<8x8xf32>
    %70 = arith.addf %69, %32 : vector<8x8xf32>
    %cst_28 = arith.constant dense<0xFF800000> : vector<8xf32>
    %71 = vector.multi_reduction <maximumf>, %70, %cst_28 [1] : vector<8x8xf32> to vector<8xf32>
    %72 = vector.shape_cast %71 : vector<8xf32> to vector<8x1xf32>
    %73 = vector.broadcast %72 : vector<8x1xf32> to vector<8x8xf32>
    %74 = arith.subf %70, %73 : vector<8x8xf32>
    %75 = math.exp %74 : vector<8x8xf32>
    %cst_29 = arith.constant dense<0.000000e+00> : vector<8xf32>
    %76 = vector.multi_reduction <add>, %75, %cst_29 [1] : vector<8x8xf32> to vector<8xf32>
    %77 = vector.shape_cast %76 : vector<8xf32> to vector<8x1xf32>
    %78 = tpu.reciprocal %77 {approx = true} : vector<8x1xf32> -> vector<8x1xf32>
    %79 = vector.broadcast %78 : vector<8x1xf32> to vector<8x8xf32>
    %80 = arith.mulf %75, %79 : vector<8x8xf32>
    %81 = arith.truncf %80 : vector<8x8xf32> to vector<8x8xbf16>
    %cst_30 = arith.constant dense<0.000000e+00> : vector<8x8xf32>
    %82 = tpu.matmul %81, %66, %cst_30 {dimension_numbers = #tpu.dot_dimension_numbers<[1], [0], [0], [1], [0, 0, 1, 1], [], []>} : vector<8x8xbf16>, vector<8x8xbf16>, vector<8x8xf32> -> vector<8x8xf32>
    %83 = arith.truncf %82 : vector<8x8xf32> to vector<8x8xbf16>
    %84 = vector.extract_strided_slice %33 {offsets = [8, 0], sizes = [8, 32], strides = [1, 1]} : vector<32x32xbf16> to vector<8x32xbf16>
    %cst_31 = arith.constant dense<0.000000e+00> : vector<8x32xf32>
    %85 = tpu.matmul %83, %84, %cst_31 {dimension_numbers = #tpu.dot_dimension_numbers<[1], [0], [0], [1], [0, 0, 1, 1], [], []>} : vector<8x8xbf16>, vector<8x32xbf16>, vector<8x32xf32> -> vector<8x32xf32>
    %86 = arith.addf %60, %85 : vector<8x32xf32>
    %87 = vector.extract_strided_slice %31 {offsets = [0, 16], sizes = [8, 8], strides = [1, 1]} : vector<8x96xf32> to vector<8x8xf32>
    %88 = arith.truncf %87 : vector<8x8xf32> to vector<8x8xbf16>
    %89 = vector.extract_strided_slice %31 {offsets = [0, 48], sizes = [8, 8], strides = [1, 1]} : vector<8x96xf32> to vector<8x8xf32>
    %90 = arith.truncf %89 : vector<8x8xf32> to vector<8x8xbf16>
    %91 = vector.extract_strided_slice %31 {offsets = [0, 80], sizes = [8, 8], strides = [1, 1]} : vector<8x96xf32> to vector<8x8xf32>
    %92 = arith.truncf %91 : vector<8x8xf32> to vector<8x8xbf16>
    %cst_32 = arith.constant dense<0.000000e+00> : vector<8x8xf32>
    %93 = tpu.matmul %88, %90, %cst_32 {dimension_numbers = #tpu.dot_dimension_numbers<[1], [1], [0], [0], [0, 0, 1, 0], [], []>} : vector<8x8xbf16>, vector<8x8xbf16>, vector<8x8xf32> -> vector<8x8xf32>
    %cst_33 = arith.constant 0.353553385 : f32
    %94 = vector.broadcast %cst_33 : f32 to vector<8x8xf32>
    %95 = arith.mulf %93, %94 : vector<8x8xf32>
    %96 = arith.addf %95, %32 : vector<8x8xf32>
    %cst_34 = arith.constant dense<0xFF800000> : vector<8xf32>
    %97 = vector.multi_reduction <maximumf>, %96, %cst_34 [1] : vector<8x8xf32> to vector<8xf32>
    %98 = vector.shape_cast %97 : vector<8xf32> to vector<8x1xf32>
    %99 = vector.broadcast %98 : vector<8x1xf32> to vector<8x8xf32>
    %100 = arith.subf %96, %99 : vector<8x8xf32>
    %101 = math.exp %100 : vector<8x8xf32>
    %cst_35 = arith.constant dense<0.000000e+00> : vector<8xf32>
    %102 = vector.multi_reduction <add>, %101, %cst_35 [1] : vector<8x8xf32> to vector<8xf32>
    %103 = vector.shape_cast %102 : vector<8xf32> to vector<8x1xf32>
    %104 = tpu.reciprocal %103 {approx = true} : vector<8x1xf32> -> vector<8x1xf32>
    %105 = vector.broadcast %104 : vector<8x1xf32> to vector<8x8xf32>
    %106 = arith.mulf %101, %105 : vector<8x8xf32>
    %107 = arith.truncf %106 : vector<8x8xf32> to vector<8x8xbf16>
    %cst_36 = arith.constant dense<0.000000e+00> : vector<8x8xf32>
    %108 = tpu.matmul %107, %92, %cst_36 {dimension_numbers = #tpu.dot_dimension_numbers<[1], [0], [0], [1], [0, 0, 1, 1], [], []>} : vector<8x8xbf16>, vector<8x8xbf16>, vector<8x8xf32> -> vector<8x8xf32>
    %109 = arith.truncf %108 : vector<8x8xf32> to vector<8x8xbf16>
    %110 = vector.extract_strided_slice %33 {offsets = [16, 0], sizes = [8, 32], strides = [1, 1]} : vector<32x32xbf16> to vector<8x32xbf16>
    %cst_37 = arith.constant dense<0.000000e+00> : vector<8x32xf32>
    %111 = tpu.matmul %109, %110, %cst_37 {dimension_numbers = #tpu.dot_dimension_numbers<[1], [0], [0], [1], [0, 0, 1, 1], [], []>} : vector<8x8xbf16>, vector<8x32xbf16>, vector<8x32xf32> -> vector<8x32xf32>
    %112 = arith.addf %86, %111 : vector<8x32xf32>
    %113 = vector.extract_strided_slice %31 {offsets = [0, 24], sizes = [8, 8], strides = [1, 1]} : vector<8x96xf32> to vector<8x8xf32>
    %114 = arith.truncf %113 : vector<8x8xf32> to vector<8x8xbf16>
    %115 = vector.extract_strided_slice %31 {offsets = [0, 56], sizes = [8, 8], strides = [1, 1]} : vector<8x96xf32> to vector<8x8xf32>
    %116 = arith.truncf %115 : vector<8x8xf32> to vector<8x8xbf16>
    %117 = vector.extract_strided_slice %31 {offsets = [0, 88], sizes = [8, 8], strides = [1, 1]} : vector<8x96xf32> to vector<8x8xf32>
    %118 = arith.truncf %117 : vector<8x8xf32> to vector<8x8xbf16>
    %cst_38 = arith.constant dense<0.000000e+00> : vector<8x8xf32>
    %119 = tpu.matmul %114, %116, %cst_38 {dimension_numbers = #tpu.dot_dimension_numbers<[1], [1], [0], [0], [0, 0, 1, 0], [], []>} : vector<8x8xbf16>, vector<8x8xbf16>, vector<8x8xf32> -> vector<8x8xf32>
    %cst_39 = arith.constant 0.353553385 : f32
    %120 = vector.broadcast %cst_39 : f32 to vector<8x8xf32>
    %121 = arith.mulf %119, %120 : vector<8x8xf32>
    %122 = arith.addf %121, %32 : vector<8x8xf32>
    %cst_40 = arith.constant dense<0xFF800000> : vector<8xf32>
    %123 = vector.multi_reduction <maximumf>, %122, %cst_40 [1] : vector<8x8xf32> to vector<8xf32>
    %124 = vector.shape_cast %123 : vector<8xf32> to vector<8x1xf32>
    %125 = vector.broadcast %124 : vector<8x1xf32> to vector<8x8xf32>
    %126 = arith.subf %122, %125 : vector<8x8xf32>
    %127 = math.exp %126 : vector<8x8xf32>
    %cst_41 = arith.constant dense<0.000000e+00> : vector<8xf32>
    %128 = vector.multi_reduction <add>, %127, %cst_41 [1] : vector<8x8xf32> to vector<8xf32>
    %129 = vector.shape_cast %128 : vector<8xf32> to vector<8x1xf32>
    %130 = tpu.reciprocal %129 {approx = true} : vector<8x1xf32> -> vector<8x1xf32>
    %131 = vector.broadcast %130 : vector<8x1xf32> to vector<8x8xf32>
    %132 = arith.mulf %127, %131 : vector<8x8xf32>
    %133 = arith.truncf %132 : vector<8x8xf32> to vector<8x8xbf16>
    %cst_42 = arith.constant dense<0.000000e+00> : vector<8x8xf32>
    %134 = tpu.matmul %133, %118, %cst_42 {dimension_numbers = #tpu.dot_dimension_numbers<[1], [0], [0], [1], [0, 0, 1, 1], [], []>} : vector<8x8xbf16>, vector<8x8xbf16>, vector<8x8xf32> -> vector<8x8xf32>
    %135 = arith.truncf %134 : vector<8x8xf32> to vector<8x8xbf16>
    %136 = vector.extract_strided_slice %33 {offsets = [24, 0], sizes = [8, 32], strides = [1, 1]} : vector<32x32xbf16> to vector<8x32xbf16>
    %cst_43 = arith.constant dense<0.000000e+00> : vector<8x32xf32>
    %137 = tpu.matmul %135, %136, %cst_43 {dimension_numbers = #tpu.dot_dimension_numbers<[1], [0], [0], [1], [0, 0, 1, 1], [], []>} : vector<8x8xbf16>, vector<8x32xbf16>, vector<8x32xf32> -> vector<8x32xf32>
    %138 = arith.addf %112, %137 : vector<8x32xf32>
    %139 = arith.addf %1, %138 : vector<8x32xf32>
    %c0_44 = arith.constant 0 : index
    %c0_45 = arith.constant 0 : index
    %140 = vector.load %arg8[%c0_44, %c0_45] : memref<1x32xf32, #tpu.memory_space<vmem>>, vector<1x32xf32>
    %141 = vector.broadcast %140 : vector<1x32xf32> to vector<8x32xf32>
    %142 = arith.addf %139, %141 : vector<8x32xf32>
    %c0_46 = arith.constant 0 : index
    %c0_47 = arith.constant 0 : index
    %143 = vector.load %arg9[%c0_46, %c0_47] : memref<1x32xf32, #tpu.memory_space<vmem>>, vector<1x32xf32>
    %c0_48 = arith.constant 0 : index
    %c0_49 = arith.constant 0 : index
    %144 = vector.load %arg10[%c0_48, %c0_49] : memref<1x32xf32, #tpu.memory_space<vmem>>, vector<1x32xf32>
    %cst_50 = arith.constant dense<0.000000e+00> : vector<8xf32>
    %145 = vector.multi_reduction <add>, %142, %cst_50 [1] : vector<8x32xf32> to vector<8xf32>
    %146 = vector.shape_cast %145 : vector<8xf32> to vector<8x1xf32>
    %cst_51 = arith.constant 3.200000e+01 : f32
    %147 = vector.broadcast %cst_51 : f32 to vector<8x1xf32>
    %148 = arith.divf %146, %147 : vector<8x1xf32>
    %149 = vector.broadcast %148 : vector<8x1xf32> to vector<8x32xf32>
    %150 = arith.subf %142, %149 : vector<8x32xf32>
    %151 = arith.mulf %150, %150 : vector<8x32xf32>
    %cst_52 = arith.constant dense<0.000000e+00> : vector<8xf32>
    %152 = vector.multi_reduction <add>, %151, %cst_52 [1] : vector<8x32xf32> to vector<8xf32>
    %153 = vector.shape_cast %152 : vector<8xf32> to vector<8x1xf32>
    %cst_53 = arith.constant 3.200000e+01 : f32
    %154 = vector.broadcast %cst_53 : f32 to vector<8x1xf32>
    %155 = arith.divf %153, %154 : vector<8x1xf32>
    %156 = vector.broadcast %148 : vector<8x1xf32> to vector<8x32xf32>
    %157 = arith.subf %142, %156 : vector<8x32xf32>
    %cst_54 = arith.constant 9.99999974E-6 : f32
    %158 = vector.broadcast %cst_54 : f32 to vector<8x1xf32>
    %159 = arith.addf %155, %158 : vector<8x1xf32>
    %160 = math.rsqrt %159 : vector<8x1xf32>
    %161 = vector.broadcast %160 : vector<8x1xf32> to vector<8x32xf32>
    %162 = arith.mulf %157, %161 : vector<8x32xf32>
    %163 = vector.broadcast %143 : vector<1x32xf32> to vector<8x32xf32>
    %164 = arith.mulf %162, %163 : vector<8x32xf32>
    %165 = vector.broadcast %144 : vector<1x32xf32> to vector<8x32xf32>
    %166 = arith.addf %164, %165 : vector<8x32xf32>
    %167 = arith.truncf %166 : vector<8x32xf32> to vector<8x32xbf16>
    %c0_55 = arith.constant 0 : index
    %c0_56 = arith.constant 0 : index
    %168 = vector.load %arg11[%c0_55, %c0_56] : memref<32x64xbf16, #tpu.memory_space<vmem>>, vector<32x64xbf16>
    %cst_57 = arith.constant dense<0.000000e+00> : vector<8x64xf32>
    %169 = tpu.matmul %167, %168, %cst_57 {dimension_numbers = #tpu.dot_dimension_numbers<[1], [0], [0], [1], [0, 0, 1, 1], [], []>} : vector<8x32xbf16>, vector<32x64xbf16>, vector<8x64xf32> -> vector<8x64xf32>
    %c0_58 = arith.constant 0 : index
    %c0_59 = arith.constant 0 : index
    %170 = vector.load %arg12[%c0_58, %c0_59] : memref<1x64xf32, #tpu.memory_space<vmem>>, vector<1x64xf32>
    %171 = vector.broadcast %170 : vector<1x64xf32> to vector<8x64xf32>
    %172 = arith.addf %169, %171 : vector<8x64xf32>
    %cst_60 = arith.constant 0.000000e+00 : f32
    %173 = vector.broadcast %cst_60 : f32 to vector<8x64xf32>
    %174 = arith.maximumf %172, %173 : vector<8x64xf32>
    %175 = arith.truncf %174 : vector<8x64xf32> to vector<8x64xbf16>
    %c0_61 = arith.constant 0 : index
    %c0_62 = arith.constant 0 : index
    %176 = vector.load %arg13[%c0_61, %c0_62] : memref<64x32xbf16, #tpu.memory_space<vmem>>, vector<64x32xbf16>
    %cst_63 = arith.constant dense<0.000000e+00> : vector<8x32xf32>
    %177 = tpu.matmul %175, %176, %cst_63 {dimension_numbers = #tpu.dot_dimension_numbers<[1], [0], [0], [1], [0, 0, 1, 1], [], []>} : vector<8x64xbf16>, vector<64x32xbf16>, vector<8x32xf32> -> vector<8x32xf32>
    %c0_64 = arith.constant 0 : index
    %c0_65 = arith.constant 0 : index
    %178 = vector.load %arg14[%c0_64, %c0_65] : memref<1x32xf32, #tpu.memory_space<vmem>>, vector<1x32xf32>
    %179 = vector.broadcast %178 : vector<1x32xf32> to vector<8x32xf32>
    %180 = arith.addf %177, %179 : vector<8x32xf32>
    %181 = arith.addf %142, %180 : vector<8x32xf32>
    %c0_66 = arith.constant 0 : index
    %c0_67 = arith.constant 0 : index
    %c0_68 = arith.constant 0 : index
    %182 = vector.load %arg15[%c0_66, %c0_67, %c0_68] : memref<1x8x32xf32, #tpu.memory_space<vmem>>, vector<1x8x32xf32>
    %183 = vector.shape_cast %182 : vector<1x8x32xf32> to vector<8x32xf32>
    %184 = vector.shape_cast %181 : vector<8x32xf32> to vector<1x8x32xf32>
    tpu.vector_store %arg15[%c0_66, %c0_67, %c0_68], %184 {strides = array<i32>} : memref<1x8x32xf32, #tpu.memory_space<vmem>>, vector<1x8x32xf32>,
    return
  }
  func.func @transform_0(%arg0: i32) -> (i32, i32, i32) {
    %c0_i32 = arith.constant 0 : i32
    %c0_i32_0 = arith.constant 0 : i32
    %c0_i32_1 = arith.constant 0 : i32
    return %arg0, %c0_i32, %c0_i32_0 : i32, i32, i32
  }
  func.func @transform_1(%arg0: i32) -> (i32, i32) {
    %c0_i32 = arith.constant 0 : i32
    %c0_i32_0 = arith.constant 0 : i32
    %c0_i32_1 = arith.constant 0 : i32
    return %c0_i32, %c0_i32_0 : i32, i32
  }
  func.func @transform_2(%arg0: i32) -> (i32, i32) {
    %c0_i32 = arith.constant 0 : i32
    %c0_i32_0 = arith.constant 0 : i32
    %c0_i32_1 = arith.constant 0 : i32
    return %c0_i32, %c0_i32_0 : i32, i32
  }
  func.func @transform_3(%arg0: i32) -> (i32, i32) {
    %c0_i32 = arith.constant 0 : i32
    %c0_i32_0 = arith.constant 0 : i32
    %c0_i32_1 = arith.constant 0 : i32
    return %c0_i32, %c0_i32_0 : i32, i32
  }
  func.func @transform_4(%arg0: i32) -> (i32, i32) {
    %c0_i32 = arith.constant 0 : i32
    %c0_i32_0 = arith.constant 0 : i32
    %c0_i32_1 = arith.constant 0 : i32
    return %c0_i32, %c0_i32_0 : i32, i32
  }
  func.func @transform_5(%arg0: i32) -> (i32, i32) {
    %c0_i32 = arith.constant 0 : i32
    %c0_i32_0 = arith.constant 0 : i32
    %c0_i32_1 = arith.constant 0 : i32
    return %c0_i32, %c0_i32_0 : i32, i32
  }
  func.func @transform_6(%arg0: i32) -> (i32, i32) {
    %c0_i32 = arith.constant 0 : i32
    %c0_i32_0 = arith.constant 0 : i32
    %c0_i32_1 = arith.constant 0 : i32
    return %c0_i32, %c0_i32_0 : i32, i32
  }
  func.func @transform_7(%arg0: i32) -> (i32, i32) {
    %c0_i32 = arith.constant 0 : i32
    %c0_i32_0 = arith.constant 0 : i32
    %c0_i32_1 = arith.constant 0 : i32
    return %c0_i32, %c0_i32_0 : i32, i32
  }
  func.func @transform_8(%arg0: i32) -> (i32, i32) {
    %c0_i32 = arith.constant 0 : i32
    %c0_i32_0 = arith.constant 0 : i32
    %c0_i32_1 = arith.constant 0 : i32
    return %c0_i32, %c0_i32_0 : i32, i32
  }
  func.func @transform_9(%arg0: i32) -> (i32, i32) {
    %c0_i32 = arith.constant 0 : i32
    %c0_i32_0 = arith.constant 0 : i32
    %c0_i32_1 = arith.constant 0 : i32
    return %c0_i32, %c0_i32_0 : i32, i32
  }
  func.func @transform_10(%arg0: i32) -> (i32, i32) {
    %c0_i32 = arith.constant 0 : i32
    %c0_i32_0 = arith.constant 0 : i32
    %c0_i32_1 = arith.constant 0 : i32
    return %c0_i32, %c0_i32_0 : i32, i32
  }
  func.func @transform_11(%arg0: i32) -> (i32, i32) {
    %c0_i32 = arith.constant 0 : i32
    %c0_i32_0 = arith.constant 0 : i32
    %c0_i32_1 = arith.constant 0 : i32
    return %c0_i32, %c0_i32_0 : i32, i32
  }
  func.func @transform_12(%arg0: i32) -> (i32, i32) {
    %c0_i32 = arith.constant 0 : i32
    %c0_i32_0 = arith.constant 0 : i32
    %c0_i32_1 = arith.constant 0 : i32
    return %c0_i32, %c0_i32_0 : i32, i32
  }
  func.func @transform_13(%arg0: i32) -> (i32, i32) {
    %c0_i32 = arith.constant 0 : i32
    %c0_i32_0 = arith.constant 0 : i32
    %c0_i32_1 = arith.constant 0 : i32
    return %c0_i32, %c0_i32_0 : i32, i32
  }
  func.func @transform_14(%arg0: i32) -> (i32, i32, i32) {
    %c0_i32 = arith.constant 0 : i32
    %c0_i32_0 = arith.constant 0 : i32
    %c0_i32_1 = arith.constant 0 : i32
    return %arg0, %c0_i32, %c0_i32_0 : i32, i32, i32
  }
}

</mosaic_0001>

<bundles_post_ra>
// kernel: tpu_custom_call.1
= control target key start
LH: loop header
LB: loop body
LE: loop exit
PB: predicated region body
PF: predicated region fallthrough
CT: control target
= control target key end

     0   :  { %s2679_s0 = inlined_call_operand.vmem [shape: f32[2,8,32], index: 0, kind: input, shape index: {}]   ;;  %s2680_s1 = inlined_call_operand.hbm [shape: f32[8,8], index: 1, kind: input, shape index: {}]   ;;  %s2681_s2 = inlined_call_operand.hbm [shape: f32[1,32], index: 2, kind: input, shape index: {}]   ;;  %s2682_s3 = inlined_call_operand.hbm [shape: f32[1,32], index: 3, kind: input, shape index: {}]   ;;  %s2683_s4 = inlined_call_operand.vmem [shape: bf16[32,96], index: 4, kind: input, shape index: {}]   ;;  %s2684_s5 = inlined_call_operand.hbm [shape: f32[1,96], index: 5, kind: input, shape index: {}]   ;;  %s2685_s6 = inlined_call_operand.vmem [shape: bf16[32,32], index: 6, kind: input, shape index: {}]   ;;  %s2686_s7 = inlined_call_operand.hbm [shape: f32[1,32], index: 7, kind: input, shape index: {}]   ;;  %s2687_s8 = inlined_call_operand.hbm [shape: f32[1,32], index: 8, kind: input, shape index: {}]   ;;  %s2688_s9 = inlined_call_operand.hbm [shape: f32[1,32], index: 9, kind: input, shape index: {}]   ;;  %s2689_s10 = inlined_call_operand.vmem [shape: bf16[32,64], index: 10, kind: input, shape index: {}]   ;;  %s2690_s11 = inlined_call_operand.vmem [shape: f32[1,64], index: 11, kind: input, shape index: {}]   ;;  %s2691_s12 = inlined_call_operand.vmem [shape: bf16[64,32], index: 12, kind: input, shape index: {}]   ;;  %s2692_s13 = inlined_call_operand.vmem [shape: f32[1,32], index: 13, kind: input, shape index: {}]   ;;  %s2693_s14 = inlined_call_operand.hbm [shape: f32[2,8,32], index: 14, kind: output, shape index: {}]  }
   0x1   :  { %2702 = sst [smem:[#allocation25_spill]] %s2681_s2 }
   0x2   :  { %19 = vsyncpa [#allocation3], 0 }
   0x3   :  { %20 = vsyncpa [#allocation6], 0 }
   0x4   :  { %21 = vsyncpa [#allocation9], 0 }
   0x5   :  { %22 = vsyncpa [#allocation12], 0 }
   0x6   :  { %23 = vsyncpa [#allocation4], 0 }
   0x7   :  { %25 = vsyncpa [#allocation4 + $0x1], 0  ;;  %s2327_s29 = smov 0   ;;  %s2329_s30 = smov 0  }
   0x8   :  { %s2331_s15 = smov 0   ;;  %s2333_s16 = smov 0  }
   0x9 LB: > { %2703 = sst [smem:[#allocation20_spill]] %s2217_s29  ;;  %s2348_s17 = sadd.s32 4294967295, %s2229_s16   ;;  %s2229_s16 = sphi %s2333_s16, %s2727_s16   ;;  %s2225_s15 = sphi %s2331_s15, %s2729_s15   ;;  %s2221_s30 = sphi %s2329_s30, %s2731_s30   ;;  %s2217_s29 = sphi %s2327_s29, %s2730_s29  }
   0xa   : > { %2704 = sst [smem:[#allocation21_spill]] %s2225_s15  ;;  %s1630_s18 = sadd.s32 4294967294, %s2229_s16  }
   0xb   : > { %s2352_s19 = sadd.s32 1, %s2229_s16   ;;  %s337_s20 = sadd.s32 1, %s2225_s15 }
   0xc   : > { %2705 = sst [smem:[#allocation22_spill]] %s2352_s19  ;;  %s334_s21 = ssub.s32 %s2229_s16, %s2352_s19 }
   0xd   : > { %p347_p0 = scmp.ne.s32.totalorder %s2225_s15, %s2221_s30  ;;  %p335_p1 = scmp.eq.s32.totalorder %s334_s21, 0 }
   0xe   : > { %p348_p2 = scmp.eq.s32.totalorder %s2348_s17, 1  ;;  %p353_p3 = scmp.ne.s32.totalorder %s2221_s30, %s2217_s29 }
   0xf   : > { %p354_p4 = scmp.eq.s32.totalorder %s1630_s18, 1  ;;  %p1631_p7 = scmp.ge.s32.totalorder %s2229_s16, 1 }
  0x10   : > { %s2363_s22 = scalar_select %p335_p1, %s2225_s15, %s337_s20  }
  0x11   : > { %p2365_p5 = por %p348_p2, %p347_p0  ;;  %p2369_p6 = por %p354_p4, %p353_p3 }
  0x12   : > { %2706 = sst [smem:[#allocation23_spill]] %s2363_s22  ;;  %p361_p8 = scmp.lt.s32.totalorder %s2229_s16, 3 }
  0x13   : > { %s2707_s23 = scalar_select %p2365_p5, 1, 0 }
  0x14   : > { %s2708_s24 = scalar_select %p2369_p6, 1, 0 }
  0x15   : > { %p2698_p9 = scmp.eq.s32.totalorder %s2348_s17, 0  ;;  %p2376_p10 = pnand %p1631_p7, %p361_p8 }
  0x16   : > { %2709 = sst [smem:[#allocation24_spill]] %s2708_s24  ;;  %s2231_s26 = smov [#allocation5]  }
  0x17   : > { %s2710_s25 = scalar_select %p2376_p10, 1, 0 }
  0x18   : > { %s385_s27 = sshll.u32 %s2231_s26, 4  ;;  %p1850_p11 = pneg %p2376_p10  ;;  %s386_s27 = int_to_ptr.vmem [resolvable:$true] %s385_s27 }
  0x19   : > { %s2232_s28 = smov [#allocation8]   ;;  %s2233_s21 = smov [#allocation11]  }
  0x1a   : > { %s410_s18 = sshll.u32 %s2232_s28, 4  ;;  %p2384_p12 = pnand %p2698_p9, %p1850_p11  ;;  %s411_s18 = int_to_ptr.vmem [resolvable:$true] %s410_s18 }
  0x1b   : > { %s435_s22 = sshll.u32 %s2233_s21, 4  ;;  %s1982_s26 = scalar_lea.vmem %s386_s27, 16  ;;  %s2388_s22 = int_to_ptr.vmem [resolvable:$true] %s435_s22 }
  0x1c   : > { %p2392_p13 = pneg %p2384_p12  ;;  %p1983_p0 = scmp.ne.s32.totalorder %s386_s27, %s1982_s26 }
  0x1d   : > { %s1989_s28 = scalar_lea.vmem %s386_s27, 32  ;;  %p1990_p3 = scmp.lt.s32.totalorder %s386_s27, %s386_s27 }
  0x1e   : > { %p1985_p1 = pnand %p1983_p0, %p2392_p13  ;;  %p1991_p4 = scmp.lt.s32.totalorder %s1989_s28, %s1982_s26 }
  0x20   : > { %p1986_p2 = pneg %p1985_p1  ;;  %p1992_p7 = por %p1991_p4, %p1990_p3 }
  0x22   : > { %p1993_p8 = pnand %p1992_p7, %p1986_p2 }
  0x24   : > { %1996 = shalt.err (!%p1993_p8)
}
  0x25   : > { %s2713_s2 = sld [smem:[#allocation25_spill]]  ;;  %s2008_s24 = scalar_lea.vmem %s411_s18, 16 }
  0x26   : > { %p2009_p11 = scmp.ne.s32.totalorder %s411_s18, %s2008_s24  ;;  %s2015_s29 = scalar_lea.vmem %s411_s18, 32 }
  0x27   : > { %p2016_p0 = scmp.lt.s32.totalorder %s411_s18, %s411_s18  ;;  %p2017_p1 = scmp.lt.s32.totalorder %s2015_s29, %s2008_s24 }
  0x28   : > { %p2011_p9 = pnand %p2009_p11, %p2392_p13 }
  0x29   : > { %p2018_p5 = por %p2017_p1, %p2016_p0 }
  0x2a   : > { %p2012_p6 = pneg %p2011_p9 }
  0x2b   : > { %1856 = dma.hbm_to_vmem [thread:$0]  (!%p2384_p12), %s2713_s2, 16, %s386_s27, [#allocation6]  }
  0x2c   : > { %p2019_p10 = pnand %p2018_p5, %p2012_p6 }
  0x2e   : > { %2022 = shalt.err (!%p2019_p10)
}
  0x2f   : > { %1862 = dma.hbm_to_vmem [thread:$0]  (!%p2384_p12), %s2684_s5, 16, %s411_s18, [#allocation9]  }
  0x30   : > { %s2034_s19 = scalar_lea.vmem %s2388_s22, 16  ;;  %s2041_s29 = scalar_lea.vmem %s2388_s22, 32 }
  0x31   : > { %p2035_p2 = scmp.ne.s32.totalorder %s2388_s22, %s2034_s19  ;;  %p2042_p5 = scmp.lt.s32.totalorder %s2388_s22, %s2388_s22 }
  0x32   : > { %p2043_p6 = scmp.lt.s32.totalorder %s2041_s29, %s2034_s19 }
  0x33   : > { %p2037_p9 = pnand %p2035_p2, %p2392_p13 }
  0x34   : > { %p2044_p10 = por %p2043_p6, %p2042_p5 }
  0x35   : > { %p2038_p3 = pneg %p2037_p9 }
  0x37   : > { %p2045_p4 = pnand %p2044_p10, %p2038_p3 }
  0x39   : > { %2048 = shalt.err (!%p2045_p4)
}
  0x3a   : > { %1868 = dma.hbm_to_vmem [thread:$0]  (!%p2384_p12), %s2687_s8, 16, %s2388_s22, [#allocation12]  }
  0x3b   : > { %s2234_s18 = smov [#allocation2]   ;;  %s2235_s26 = smov [#allocation7]  }
  0x3c   : > { %s374_s21 = sshll.u32 %s2234_s18, 4  ;;  %s396_s28 = sshll.u32 %s2235_s26, 4  ;;  %s375_s21 = int_to_ptr.vmem [resolvable:$true] %s374_s21  ;;  %s397_s28 = int_to_ptr.vmem [resolvable:$true] %s396_s28 }
  0x3d   : > { %s2060_s2 = scalar_lea.vmem %s375_s21, 128  ;;  %p2068_p0 = scmp.lt.s32.totalorder %s375_s21, %s375_s21 }
  0x3e   : > { %p2061_p7 = scmp.ne.s32.totalorder %s375_s21, %s2060_s2  ;;  %p2069_p1 = scmp.lt.s32.totalorder %s2060_s2, %s2060_s2 }
  0x40   : > { %p2063_p8 = pnand %p2061_p7, %p2392_p13  ;;  %p2070_p2 = por %p2069_p1, %p2068_p0 }
  0x42   : > { %p2064_p11 = pneg %p2063_p8 }
  0x44   : > { %p2071_p9 = pnand %p2070_p2, %p2064_p11 }
  0x46   : > { %2074 = shalt.err (!%p2071_p9)
}
  0x47   : > { %1853 = dma.hbm_to_vmem [thread:$0]  (!%p2384_p12), %s2680_s1, 128, %s375_s21, [#allocation3]  }
  0x48   : > { %s2086_s22 = scalar_lea.vmem %s397_s28, 16  ;;  %s2093_s24 = scalar_lea.vmem %s397_s28, 32 }
  0x49   : > { %p2087_p3 = scmp.ne.s32.totalorder %s397_s28, %s2086_s22  ;;  %p2094_p10 = scmp.lt.s32.totalorder %s397_s28, %s397_s28 }
  0x4a   : > { %p2095_p4 = scmp.lt.s32.totalorder %s2093_s24, %s2086_s22 }
  0x4b   : > { %p2089_p5 = pnand %p2087_p3, %p2392_p13 }
  0x4c   : > { %p2096_p7 = por %p2095_p4, %p2094_p10 }
  0x4d   : > { %p2090_p6 = pneg %p2089_p5 }
  0x4f   : > { %p2097_p8 = pnand %p2096_p7, %p2090_p6 }
  0x51   : > { %2100 = shalt.err (!%p2097_p8)
}
  0x52   : > { %1859 = dma.hbm_to_vmem [thread:$0]  (!%p2384_p12), %s2682_s3, 16, %s397_s28, [#allocation6]  }
  0x53   : > { %s2236_s18 = smov [#allocation10]   ;;  %s2237_s26 = smov [#allocation13]  }
  0x54   : > { %s424_s21 = sshll.u32 %s2236_s18, 4  ;;  %s446_s19 = sshll.u32 %s2237_s26, 4  ;;  %s425_s21 = int_to_ptr.vmem [resolvable:$true] %s424_s21  ;;  %s447_s19 = int_to_ptr.vmem [resolvable:$true] %s446_s19 }
  0x55   : > { %s2112_s29 = scalar_lea.vmem %s425_s21, 16  ;;  %s2119_s22 = scalar_lea.vmem %s425_s21, 32 }
  0x56   : > { %p2113_p11 = scmp.ne.s32.totalorder %s425_s21, %s2112_s29  ;;  %p2120_p2 = scmp.lt.s32.totalorder %s425_s21, %s425_s21 }
  0x57   : > { %p2121_p9 = scmp.lt.s32.totalorder %s2119_s22, %s2112_s29 }
  0x58   : > { %p2115_p0 = pnand %p2113_p11, %p2392_p13 }
  0x59   : > { %p2122_p3 = por %p2121_p9, %p2120_p2 }
  0x5a   : > { %p2116_p1 = pneg %p2115_p0 }
  0x5c   : > { %p2123_p5 = pnand %p2122_p3, %p2116_p1 }
  0x5e   : > { %2126 = shalt.err (!%p2123_p5)
}
  0x5f   : > { %1865 = dma.hbm_to_vmem [thread:$0]  (!%p2384_p12), %s2686_s7, 16, %s425_s21, [#allocation9]  }
  0x60   : > { %s2138_s2 = scalar_lea.vmem %s447_s19, 16  ;;  %s2145_s27 = scalar_lea.vmem %s447_s19, 32 }
  0x61   : > { %p2139_p6 = scmp.ne.s32.totalorder %s447_s19, %s2138_s2  ;;  %p2146_p7 = scmp.lt.s32.totalorder %s447_s19, %s447_s19 }
  0x62   : > { %p2147_p8 = scmp.lt.s32.totalorder %s2145_s27, %s2138_s2 }
  0x63   : > { %p2141_p10 = pnand %p2139_p6, %p2392_p13 }
  0x64   : > { %p2148_p11 = por %p2147_p8, %p2146_p7 }
  0x65   : > { %p2142_p4 = pneg %p2141_p10 }
  0x67   : > { %p2149_p0 = pnand %p2148_p11, %p2142_p4 }
  0x69   : > { %2152 = shalt.err (!%p2149_p0)
}
  0x6a   : > { %1871 = dma.hbm_to_vmem [thread:$0]  (!%p2384_p12), %s2688_s9, 16, %s447_s19, [#allocation12]  }
  0x6b   : > { %p2714_p1 = scmp.ne.s32.totalorder %s2710_s25, 0 }
  0x6c   : > { %p2715_p2 = scmp.eq.s32.totalorder (!%p2714_p1), %s2348_s17, 0 }
  0x6d   : > { %478 = sbr.rel (%p2714_p1) target bundleno = 3627 (0xe2b), region = 76 }
  0x72   : > { %2196 = dma.done.wait (%p2715_p2), [#allocation3], 128   ;;  %p2716_p13 = pmov %p2715_p2 }
  0x73   : > { %p2717_p9 = pmov %p2715_p2 }
  0x74   : > { %2198 = vsyncadd (%p2716_p13), [#allocation3], 4294967168 }
  0x75   : > { %2200 = dma.done.wait (%p2717_p9), [#allocation6], 32   ;;  %p2718_p3 = pmov %p2715_p2 }
  0x76   : > { %p2719_p5 = pmov %p2715_p2 }
  0x77   : > { %2202 = vsyncadd (%p2718_p3), [#allocation6], 4294967264 }
  0x78   : > { %2204 = dma.done.wait (%p2719_p5), [#allocation9], 32   ;;  %p2720_p12 = pmov %p2715_p2 }
  0x79   : > { %p2721_p6 = pmov %p2715_p2 }
  0x7a   : > { %2206 = vsyncadd (%p2720_p12), [#allocation9], 4294967264 }
  0x7b   : > { %2208 = dma.done.wait (%p2721_p6), [#allocation12], 32   ;;  %p2722_p10 = pmov %p2715_p2 }
  0x7c   : > { %p547_p4 = scmp.lt.s32.totalorder %s2348_s17, 1  ;;  %vm555_vm0 = vcmask 261120   ;;  %v1943_v7 = vld [vmem:[%s2683_s4 + $0x8] sm:$0xff]   ;;  %v2238_v8 = vmov 0.0   ;;  %vm2239_vm1 = vmmov 0   ;;  %v1944_v9 = vld [vmem:[%s2683_s4] sm:$0xff]  }
  0x7d   : > { %2210 = vsyncadd (%p2722_p10), [#allocation12], 4294967264  ;;  %1720 = vmatprep.subr.bf16.mxu1 %v2238_v8  ;;  %1724 = vmatprep.mubr.msk.bf16.mxu1 %vm2239_vm1, %v2238_v8  ;;  %v1650_v14 = vld [vmem:[#allocation5] ss:$0 sm:$0xff]  ;;  %v1651_v16 = vld [vmem:[#allocation7] ss:$0 sm:$0xff] }
  0x7e   : > { %s548_s15 = scalar_select %p547_p4, %s2348_s17, 1  ;;  %1721 = vmatpush3.bf16.msra.mxu1 %v1943_v7  ;;  %1734 = vmatprep.subr.bf16.mxu0 %v2238_v8  ;;  %v1652_v20 = vld [vmem:[#allocation8] ss:$0 sm:$0xff]  ;;  %vm660_vm2 = vcmask 64512   ;;  %v2513_v33 = vld [vmem:[#allocation2] sm:$0xff]  ;;  %vm726_vm3 = vcmask 1043456  }
  0x7f   : > { %1722 = vmatprep.subr.bf16.mxu1 %v2238_v8  ;;  %1736 = vmatprep.mubr.msk.bf16.mxu0 %vm2239_vm1, %v2238_v8  ;;  %s2240_s2 = smov 120   ;;  %s2241_s27 = smov 96   ;;  %vm1442_vm4 = vcmask 523264  }
  0x80   : > { %s1649_s25 = sshll.u32 %s548_s15, 3  ;;  %s2242_s18 = smov 88  }
  0x81   : > { %s550_s19 = scalar_lea.vmem %s2679_s0, %s1649_s25  ;;  %s2243_s26 = smov 56  }
  0x82   : > { %v2474_v0 = vld [vmem:[%s550_s19] sm:$0xff]  ;;  %1723 = vmatpush3.bf16.msra.mxu1 %v1944_v9  ;;  %s2244_s15 = smov 64   ;;  %s2245_s25 = smov 80  }
  0x83   : > { %v556_v1 = vsel %vm555_vm0, %v2474_v0, 0.0  ;;  %1728 = vmatprep.subr.bf16.mxu1 %v2238_v8  ;;  %s2246_s20 = smov 112   ;;  %v653_v9 = vld [vmem:[%s2685_s6 + $0x4] sm:$0xf]  ;;  %s2247_s24 = smov 48  }
  0x84   : > { %557 = vadd.xlane.f32.xlu0 %v556_v1  ;;  %s2248_s28 = smov 104   ;;  %s544_s21 = sand.u32 1, %s2221_s30  }
  0x85   : > { %s1648_s19 = sshll.u32 %s544_s21, 3  ;;  %p2723_p8 = scmp.ne.s32.totalorder %s2707_s23, 0 }
 0x10d   : > { %v558_v2 = vpop.xlane.xlu0 %557 }
 0x10e   : > { %v560_v3 = vmul.f32 0.03125, %v558_v2 }
 0x110   : > { %v561_v4 = vsub.f32 %v2474_v0, %v560_v3 }
 0x112   : > { %v562_v5 = vmul.f32 %v561_v4, %v561_v4 }
 0x114   : > { %v563_v6 = vsel %vm555_vm0, %v562_v5, 0.0 }
 0x115   : > { %564 = vadd.xlane.f32.xlu0 %v563_v6  ;;  %v652_v6 = vld [vmem:[%s2685_s6] sm:$0xf] }
 0x116   : > { %v934_v7 = vsel %vm726_vm3, %v652_v6, 0 }
 0x19e   : > { %v565_v10 = vpop.xlane.xlu0 %564 }
 0x19f   : > { %v566_v11 = vmul.f32 0.03125, %v565_v10  ;;  %v888_v10 = vsel %vm726_vm3, %v653_v9, 0 }
 0x1a1   : > { %v567_v12 = vadd.f32 1e-05, %v566_v11 }
 0x1a3   : > { %1951 = vrsqrt.f32 %v567_v12 }
 0x1b0   : > { %v1952_v13 = vpop.eup %1951 }
 0x1b1   : > { %v569_v15 = vmul.f32 %v1952_v13, %v561_v4 }
 0x1b3   : > { %v576_v17 = vmul.f32 %v1650_v14, %v569_v15 }
 0x1b5   : > { %v583_v18 = vadd.f32 %v1651_v16, %v576_v17 }
 0x1b7   : > { %v584_v19 = vpack.c.bf16 %v583_v18, %v583_v18 }
 0x1b9   : > { %1725 = vmatmul.mubr.msk.bf16.vlgmr.msra.gmra.mxu1 %vm555_vm0, %v584_v19 }
 0x1ba   : > { %1730 = vmatprep.mubr.msk.bf16.mxu1 %vm2239_vm1, %v2238_v8 }
 0x279   : > { %v645_v21 = vpop.f32.mrf.mxu1 }
 0x27a   : > { %v646_v22 = vadd.f32 %v1652_v20, %v645_v21 }
 0x27b   : > { %v1726_v23 = vpop.f32.mrf.mxu1 }
 0x27c   : > { %v2497_v24 = vpack.c.bf16 %v646_v22, %v646_v22 }
 0x27d   : > { %v648_v25 = vpop.f32.mrf.mxu1 }
 0x27e   : > { %771 = vrot.lane.b32.xlu0 %v2497_v24, %s2240_s2  ;;  %658 = vrot.lane.b32.xlu1 %v2497_v24, %s2241_s27  ;;  %s2249_s2 = smov 72  }
 0x27f   : > { %v1727_v26 = vpop.f32.mrf.mxu1 }
 0x282   : > { %773 = vrot.lane.b32.xlu1 %v2497_v24, %s2242_s18 }
 0x2f0   : > { %v659_v27 = vpop.permute.xlu1 %658  ;;  %v772_v31 = vpop.permute.xlu0 %771 }
 0x2f1   : > { %v665_v28 = vsel %vm660_vm2, %v659_v27, 0 }
 0x2f2   : > { %1729 = vmatpush3.bf16.xpose.msra.mxu1 %v665_v28 }
 0x2f3   : > { %1740 = vmatprep.subr.bf16.mxu1 %v2238_v8 }
 0x2f4   : > { %v774_v29 = vpop.permute.xlu1 %773 }
 0x2f5   : > { %v779_v30 = vsel %vm660_vm2, %v774_v29, 0 }
 0x2f9   : > { %1731 = vmatmul.mubr.msk.bf16.vlgmr.msra.gmra.mxu1 %vm660_vm2, %v2497_v24 }
 0x2fa   : > { %1741 = vmatpush3.bf16.xpose.msra.mxu1 %v779_v30  ;;  %1742 = vmatprep.mubr.msk.bf16.mxu1 %vm2239_vm1, %v2238_v8 }
 0x2fb   : > { %1752 = vmatprep.subr.bf16.mxu1 %v2238_v8 }
 0x301   : > { %1743 = vmatmul.mubr.msk.bf16.vlgmr.msra.gmra.mxu1 %vm660_vm2, %v772_v31 }
 0x302   : > { %1754 = vmatprep.mubr.msk.bf16.mxu1 %vm2239_vm1, %v2238_v8  ;;  %1753 = vmatpush3.bf16.msra.mxu1 %v888_v10 }
 0x303   : > { %1764 = vmatprep.subr.bf16.mxu1 %v2238_v8 }
 0x3b9   : > { %v701_v32 = vpop.f32.mrf.mxu1 }
 0x3ba   : > { %v707_v34 = vmul.f32 0.35355338, %v701_v32 }
 0x3bb   : > { %v1732_v35 = vpop.f32.mrf.mxu1 }
 0x3bc   : > { %v708_v36 = vadd.f32 %v707_v34, %v2513_v33 }
 0x3bd   : > { %v704_v37 = vpop.f32.mrf.mxu1 }
 0x3be   : > { %v709_v38 = vsel %vm660_vm2, %v708_v36, -inf }
 0x3bf   : > { %710 = vmax.xlane.f32.xlu1 %v709_v38  ;;  %v1733_v39 = vpop.f32.mrf.mxu1 }
 0x3c1   : > { %v815_v40 = vpop.f32.mrf.mxu1 }
 0x3c2   : > { %v821_v41 = vmul.f32 0.35355338, %v815_v40 }
 0x3c3   : > { %v1744_v42 = vpop.f32.mrf.mxu1 }
 0x3c4   : > { %v822_v43 = vadd.f32 %v821_v41, %v2513_v33 }
 0x3c5   : > { %v818_v44 = vpop.f32.mrf.mxu1 }
 0x3c6   : > { %v823_v45 = vsel %vm660_vm2, %v822_v43, -inf }
 0x3c7   : > { %824 = vmax.xlane.f32.xlu0 %v823_v45  ;;  %v1745_v46 = vpop.f32.mrf.mxu1 }
 0x3dd   : > { %835 = vrot.lane.b32.xlu0 %v2497_v24, %s2243_s26  ;;  %s2250_s26 = smov 40  }
 0x448   : > { %v711_v47 = vpop.xlane.xlu1 %710 }
 0x449   : > { %v712_v48 = vsub.f32 %v708_v36, %v711_v47 }
 0x44b   : > { %v713_v49 = vmul.f32 1.442695, %v712_v48 }
 0x44d   : > { %1953 = vpow2.f32 %v713_v49 }
 0x450   : > { %v825_v50 = vpop.xlane.xlu0 %824 }
 0x451   : > { %v826_v51 = vsub.f32 %v822_v43, %v825_v50 }
 0x453   : > { %v827_v52 = vmul.f32 1.442695, %v826_v51 }
 0x454   : > { %v836_v63 = vpop.permute.xlu0 %835 }
 0x455   : > { %1955 = vpow2.f32 %v827_v52  ;;  %v841_v2 = vsel %vm726_vm3, %v836_v63, 0 }
 0x45a   : > { %v1954_v53 = vpop.eup %1953 }
 0x45b   : > { %v715_v54 = vsel %vm660_vm2, %v1954_v53, 0.0 }
 0x45c   : > { %716 = vadd.xlane.f32.xlu1 %v715_v54 }
 0x462   : > { %v1956_v55 = vpop.eup %1955 }
 0x463   : > { %v829_v56 = vsel %vm660_vm2, %v1956_v55, 0.0 }
 0x464   : > { %830 = vadd.xlane.f32.xlu1 %v829_v56  ;;  %v654_v56 = vld [vmem:[%s2685_s6 + $0x8] sm:$0xf] }
 0x475   : > { %721 = vrot.lane.b32.xlu1 %v2497_v24, %s2244_s15 }
 0x479   : > { %978 = vrot.lane.b32.xlu1 %v2497_v24, %s2245_s25  ;;  %s2251_s25 = smov [#allocation14]  }
 0x47d   : > { %976 = vrot.lane.b32.xlu1 %v2497_v24, %s2246_s20  ;;  %s2157_s20 = sshll.u32 %s2251_s25, 4  ;;  %s2158_s20 = int_to_ptr.vmem [resolvable:$false] %s2157_s20 }
 0x4e5   : > { %v717_v57 = vpop.xlane.xlu1 %716 }
 0x4e6   : > { %1957 = vrcp.f32 %v717_v57  ;;  %v1093_v57 = vsel %vm726_vm3, %v654_v56, 0 }
 0x4ed   : > { %v831_v58 = vpop.xlane.xlu1 %830 }
 0x4ee   : > { %1959 = vrcp.f32 %v831_v58 }
 0x4f1   : > { %v722_v59 = vpop.permute.xlu1 %721 }
 0x4f2   : > { %v728_v60 = vsel %vm726_vm3, %v722_v59, 0 }
 0x4f3   : > { %v1958_v61 = vpop.eup %1957  ;;  %1735 = vmatpush3.bf16.msra.mxu0 %v728_v60 }
 0x4f4   : > { %1746 = vmatprep.subr.bf16.mxu0 %v2238_v8  ;;  %v719_v62 = vmul.f32 %v1958_v61, %v1954_v53 }
 0x4f5   : > { %v979_v16 = vpop.permute.xlu1 %978 }
 0x4f6   : > { %v720_v1 = vpack.c.bf16 %v719_v62, %v719_v62  ;;  %v984_v20 = vsel %vm660_vm2, %v979_v16, 0  ;;  %v655_v16 = vld [vmem:[%s2685_s6 + $0xc] sm:$0xf] }
 0x4f8   : > { %1737 = vmatmul.mubr.msk.bf16.vlgmr.msra.gmra.mxu0 %vm660_vm2, %v720_v1 }
 0x4f9   : > { %1747 = vmatpush3.bf16.msra.mxu0 %v841_v2  ;;  %1748 = vmatprep.mubr.msk.bf16.mxu0 %vm2239_vm1, %v2238_v8  ;;  %v977_v23 = vpop.permute.xlu1 %976 }
 0x4fa   : > { %1758 = vmatprep.subr.bf16.mxu0 %v2238_v8 }
 0x4fb   : > { %v1960_v3 = vpop.eup %1959 }
 0x4fc   : > { %v833_v4 = vmul.f32 %v1960_v3, %v1956_v55 }
 0x4fe   : > { %v834_v5 = vpack.c.bf16 %v833_v4, %v833_v4 }
 0x500   : > { %1749 = vmatmul.mubr.msk.bf16.vlgmr.msra.gmra.mxu0 %vm660_vm2, %v834_v5 }
 0x501   : > { %1760 = vmatprep.mubr.msk.bf16.mxu0 %vm2239_vm1, %v2238_v8  ;;  %1759 = vmatpush3.bf16.msra.mxu0 %v934_v7 }
 0x502   : > { %1770 = vmatprep.subr.bf16.mxu0 %v2238_v8 }
 0x5b8   : > { %v764_v11 = vpop.f32.mrf.mxu0 }
 0x5b9   : > { %v770_v12 = vpack.c.bf16 %v764_v11, %v764_v11 }
 0x5ba   : > { %v1738_v13 = vpop.f32.mrf.mxu0 }
 0x5bb   : > { %1761 = vmatmul.mubr.msk.bf16.vlgmr.msra.gmra.mxu0 %vm660_vm2, %v770_v12 }
 0x5bc   : > { %v767_v14 = vpop.f32.mrf.mxu0  ;;  %1772 = vmatprep.mubr.msk.bf16.mxu0 %vm2239_vm1, %v2238_v8 }
 0x5be   : > { %v1739_v15 = vpop.f32.mrf.mxu0 }
 0x5c0   : > { %v877_v17 = vpop.f32.mrf.mxu0 }
 0x5c1   : > { %v883_v18 = vpack.c.bf16 %v877_v17, %v877_v17  ;;  %v1253_v17 = vsel %vm726_vm3, %v655_v16, 0 }
 0x5c2   : > { %v1750_v19 = vpop.f32.mrf.mxu0 }
 0x5c3   : > { %1755 = vmatmul.mubr.msk.bf16.vlgmr.msra.gmra.mxu1 %vm660_vm2, %v883_v18 }
 0x5c4   : > { %1765 = vmatpush3.bf16.xpose.msra.mxu1 %v984_v20  ;;  %v880_v21 = vpop.f32.mrf.mxu0  ;;  %1766 = vmatprep.mubr.msk.bf16.mxu1 %vm2239_vm1, %v2238_v8 }
 0x5c5   : > { %1776 = vmatprep.subr.bf16.mxu1 %v2238_v8 }
 0x5c6   : > { %v1751_v22 = vpop.f32.mrf.mxu0 }
 0x5cb   : > { %1767 = vmatmul.mubr.msk.bf16.vlgmr.msra.gmra.mxu1 %vm660_vm2, %v977_v23 }
 0x5cc   : > { %1778 = vmatprep.mubr.msk.bf16.mxu1 %vm2239_vm1, %v2238_v8  ;;  %1777 = vmatpush3.bf16.msra.mxu1 %v1093_v57 }
 0x5cd   : > { %1788 = vmatprep.subr.bf16.mxu1 %v2238_v8 }
 0x67b   : > { %v970_v25 = vpop.f32.mrf.mxu0 }
 0x67d   : > { %v1762_v26 = vpop.f32.mrf.mxu0 }
 0x67f   : > { %v973_v27 = vpop.f32.mrf.mxu0 }
 0x681   : > { %v1763_v28 = vpop.f32.mrf.mxu0 }
 0x683   : > { %v924_v29 = vpop.f32.mrf.mxu1 }
 0x684   : > { %v2556_v30 = vadd.f32 %v970_v25, %v924_v29 }
 0x685   : > { %v1756_v31 = vpop.f32.mrf.mxu1 }
 0x687   : > { %v927_v32 = vpop.f32.mrf.mxu1 }
 0x688   : > { %v1668_v32 = vld [vmem:[#allocation10] ss:$0 sm:$0xff] }
 0x689   : > { %v1757_v34 = vpop.f32.mrf.mxu1 }
 0x68b   : > { %v1020_v35 = vpop.f32.mrf.mxu1 }
 0x68c   : > { %v1026_v36 = vmul.f32 0.35355338, %v1020_v35 }
 0x68d   : > { %v1768_v37 = vpop.f32.mrf.mxu1 }
 0x68e   : > { %v1027_v38 = vadd.f32 %v1026_v36, %v2513_v33 }
 0x68f   : > { %v1023_v39 = vpop.f32.mrf.mxu1 }
 0x690   : > { %v1028_v40 = vsel %vm660_vm2, %v1027_v38, -inf }
 0x691   : > { %1029 = vmax.xlane.f32.xlu1 %v1028_v40  ;;  %v1769_v41 = vpop.f32.mrf.mxu1 }
 0x6a2   : > { %1040 = vrot.lane.b32.xlu1 %v2497_v24, %s2247_s24  ;;  %s1682_s24 = sshll.u32 %s2348_s17, 7  ;;  %s1489_s17 = scalar_lea.sflag [#allocation4], %s544_s21 }
 0x6a6   : > { %1136 = vrot.lane.b32.xlu1 %v2497_v24, %s2248_s28  ;;  %s546_s28 = scalar_lea.vmem [#allocation14], %s1648_s19  ;;  %s2159_s19 = scalar_lea.vmem %s2158_s20, 256 }
 0x71a   : > { %v1030_v42 = vpop.xlane.xlu1 %1029 }
 0x71b   : > { %v1031_v43 = vsub.f32 %v1027_v38, %v1030_v42 }
 0x71d   : > { %v1032_v44 = vmul.f32 1.442695, %v1031_v43 }
 0x71e   : > { %v1041_v45 = vpop.permute.xlu1 %1040 }
 0x71f   : > { %1961 = vpow2.f32 %v1032_v44  ;;  %v1046_v46 = vsel %vm726_vm3, %v1041_v45, 0  ;;  %v1945_v45 = vld [vmem:[%s2689_s10 + $0x8] sm:$0xff]  }
 0x720   : > { %1771 = vmatpush3.bf16.msra.mxu0 %v1046_v46  ;;  %v1947_v46 = vld [vmem:[%s2691_s12 + $0x18] sm:$0xff]  }
 0x721   : > { %1782 = vmatprep.subr.bf16.mxu0 %v2238_v8 }
 0x722   : > { %v1137_v55 = vpop.permute.xlu1 %1136 }
 0x72c   : > { %v1962_v47 = vpop.eup %1961 }
 0x72d   : > { %v1034_v48 = vsel %vm660_vm2, %v1962_v47, 0.0 }
 0x72e   : > { %1035 = vadd.xlane.f32.xlu0 %v1034_v48 }
 0x744   : > { %1138 = vrot.lane.b32.xlu0 %v2497_v24, %s2249_s2  ;;  %s1502_s2 = sshll.u32 %s546_s28, 4  ;;  %s2639_s2 = int_to_ptr.vmem [resolvable:$true] %s1502_s2 }
 0x745   : > { %s2153_s15 = scalar_lea.vmem %s2639_s2, 128  ;;  %p2160_p1 = scmp.lt.s32.totalorder %s2639_s2, %s2158_s20 }
 0x746   : > { %p2154_p7 = scmp.ne.s32.totalorder %s2639_s2, %s2153_s15  ;;  %p2161_p2 = scmp.lt.s32.totalorder %s2159_s19, %s2153_s15 }
 0x748   : > { %p2155_p11 = pnand %p2154_p7, %p2723_p8  ;;  %p2162_p13 = por %p2161_p2, %p2160_p1 }
 0x74a   : > { %p2156_p0 = pneg %p2155_p11 }
 0x74c   : > { %p2163_p9 = pnand %p2162_p13, %p2156_p0 }
 0x7b7   : > { %v1036_v49 = vpop.xlane.xlu0 %1035 }
 0x7b8   : > { %1963 = vrcp.f32 %v1036_v49 }
 0x7bb   : > { %v1139_v52 = vpop.permute.xlu0 %1138 }
 0x7bc   : > { %v1144_v54 = vsel %vm660_vm2, %v1139_v52, 0  ;;  %v1669_v52 = vld [vmem:[#allocation11] ss:$0 sm:$0xff] }
 0x7c5   : > { %v1964_v50 = vpop.eup %1963 }
 0x7c6   : > { %v1038_v51 = vmul.f32 %v1964_v50, %v1962_v47  ;;  %v1948_v47 = vld [vmem:[%s2691_s12 + $0x10] sm:$0xff]  }
 0x7c8   : > { %v1039_v53 = vpack.c.bf16 %v1038_v51, %v1038_v51 }
 0x7ca   : > { %1773 = vmatmul.mubr.msk.bf16.vlgmr.msra.gmra.mxu0 %vm660_vm2, %v1039_v53 }
 0x7cb   : > { %1783 = vmatpush3.bf16.xpose.msra.mxu0 %v1144_v54  ;;  %1784 = vmatprep.mubr.msk.bf16.mxu0 %vm2239_vm1, %v2238_v8  ;;  %v1670_v54 = vld [vmem:[#allocation13] ss:$0 sm:$0xff] }
 0x7cc   : > { %1794 = vmatprep.subr.bf16.mxu0 %v2238_v8 }
 0x7d2   : > { %1785 = vmatmul.mubr.msk.bf16.vlgmr.msra.gmra.mxu0 %vm660_vm2, %v1137_v55 }
 0x7d3   : > { %1796 = vmatprep.mubr.msk.bf16.mxu0 %vm2239_vm1, %v2238_v8  ;;  %1795 = vmatpush3.bf16.msra.mxu0 %v1253_v17 }
 0x7d4   : > { %1808 = vmatprep.subr.bf16.mxu0 %v2238_v8 }
 0x88a   : > { %v1082_v58 = vpop.f32.mrf.mxu0 }
 0x88b   : > { %v1088_v59 = vpack.c.bf16 %v1082_v58, %v1082_v58  ;;  %v1949_v58 = vld [vmem:[%s2691_s12 + $0x8] sm:$0xff]  }
 0x88c   : > { %v1774_v60 = vpop.f32.mrf.mxu0 }
 0x88d   : > { %1779 = vmatmul.mubr.msk.bf16.vlgmr.msra.gmra.mxu1 %vm660_vm2, %v1088_v59  ;;  %v1950_v59 = vld [vmem:[%s2691_s12] sm:$0xff]  }
 0x88e   : > { %v1085_v61 = vpop.f32.mrf.mxu0  ;;  %1790 = vmatprep.mubr.msk.bf16.mxu1 %vm2239_vm1, %v2238_v8  ;;  %v1671_v60 = vld [vmem:[%s2690_s11] ss:$0 sm:$0xff] }
 0x890   : > { %v1775_v62 = vpop.f32.mrf.mxu0 }
 0x892   : > { %v1180_v63 = vpop.f32.mrf.mxu0 }
 0x893   : > { %v1186_v1 = vmul.f32 0.35355338, %v1180_v63 }
 0x894   : > { %v1786_v2 = vpop.f32.mrf.mxu0 }
 0x895   : > { %v1187_v3 = vadd.f32 %v1186_v1, %v2513_v33 }
 0x896   : > { %v1183_v4 = vpop.f32.mrf.mxu0 }
 0x897   : > { %v1188_v5 = vsel %vm660_vm2, %v1187_v3, -inf }
 0x898   : > { %1189 = vmax.xlane.f32.xlu1 %v1188_v5  ;;  %v1787_v6 = vpop.f32.mrf.mxu0 }
 0x921   : > { %v1190_v7 = vpop.xlane.xlu1 %1189 }
 0x922   : > { %v1191_v9 = vsub.f32 %v1187_v3, %v1190_v7 }
 0x924   : > { %v1192_v10 = vmul.f32 1.442695, %v1191_v9 }
 0x926   : > { %1965 = vpow2.f32 %v1192_v10 }
 0x933   : > { %v1966_v11 = vpop.eup %1965 }
 0x934   : > { %v1194_v12 = vsel %vm660_vm2, %v1966_v11, 0.0 }
 0x935   : > { %1195 = vadd.xlane.f32.xlu0 %v1194_v12 }
 0x94b   : > { %1200 = vrot.lane.b32.xlu0 %v2497_v24, %s2250_s26  ;;  %s2637_s26 = scalar_lea.hbm %s2693_s14, %s1682_s24 }
 0x94d   : > { %v1129_v13 = vpop.f32.mrf.mxu1 }
 0x94e   : > { %v1135_v14 = vadd.f32 %v1129_v13, %v2556_v30 }
 0x94f   : > { %v1780_v33 = vpop.f32.mrf.mxu1 }
 0x951   : > { %v1132_v15 = vpop.f32.mrf.mxu1 }
 0x953   : > { %v1781_v18 = vpop.f32.mrf.mxu1 }
 0x9be   : > { %v1196_v19 = vpop.xlane.xlu0 %1195 }
 0x9bf   : > { %1967 = vrcp.f32 %v1196_v19 }
 0x9c2   : > { %v1201_v20 = vpop.permute.xlu0 %1200 }
 0x9c3   : > { %v1206_v24 = vsel %vm726_vm3, %v1201_v20, 0 }
 0x9c4   : > { %1789 = vmatpush3.bf16.msra.mxu1 %v1206_v24 }
 0x9c5   : > { %1800 = vmatprep.subr.bf16.mxu1 %v2238_v8 }
 0x9cc   : > { %v1968_v21 = vpop.eup %1967 }
 0x9cd   : > { %v1198_v22 = vmul.f32 %v1968_v21, %v1966_v11 }
 0x9cf   : > { %v1199_v23 = vpack.c.bf16 %v1198_v22, %v1198_v22 }
 0x9d1   : > { %1791 = vmatmul.mubr.msk.bf16.vlgmr.msra.gmra.mxu1 %vm660_vm2, %v1199_v23 }
 0x9d2   : > { %1804 = vmatprep.mubr.msk.bf16.mxu1 %vm2239_vm1, %v2238_v8  ;;  %1801 = vmatpush3.bf16.msra.mxu1 %v1945_v45 }
 0x9d3   : > { %1802 = vmatprep.subr.bf16.mxu1 %v2238_v8 }
 0xa91   : > { %v1242_v25 = vpop.f32.mrf.mxu1 }
 0xa92   : > { %v1248_v26 = vpack.c.bf16 %v1242_v25, %v1242_v25 }
 0xa93   : > { %v1792_v27 = vpop.f32.mrf.mxu1 }
 0xa94   : > { %1797 = vmatmul.mubr.msk.bf16.vlgmr.msra.gmra.mxu0 %vm660_vm2, %v1248_v26 }
 0xa95   : > { %v1245_v28 = vpop.f32.mrf.mxu1  ;;  %1816 = vmatprep.mubr.msk.bf16.mxu0 %vm2239_vm1, %v2238_v8  ;;  %1809 = vmatpush3.bf16.msra.mxu0 %v1947_v46 }
 0xa96   : > { %1810 = vmatprep.subr.bf16.mxu0 %v2238_v8 }
 0xa97   : > { %v1793_v29 = vpop.f32.mrf.mxu1 }
 0xa99   : > { %1811 = vmatpush3.bf16.msra.mxu0 %v1948_v47 }
 0xa9a   : > { %1812 = vmatprep.subr.bf16.mxu0 %v2238_v8 }
 0xa9d   : > { %1813 = vmatpush3.bf16.msra.mxu0 %v1949_v58 }
 0xa9e   : > { %1814 = vmatprep.subr.bf16.mxu0 %v2238_v8  ;;  %v1675_v8 = vld [vmem:[%s2692_s13] ss:$0 sm:$0xff] }
 0xaa1   : > { %1815 = vmatpush3.bf16.msra.mxu0 %v1950_v59 }
 0xb54   : > { %v1289_v30 = vpop.f32.mrf.mxu0 }
 0xb55   : > { %v1295_v31 = vadd.f32 %v1289_v30, %v1135_v14 }
 0xb56   : > { %v1798_v34 = vpop.f32.mrf.mxu0 }
 0xb57   : > { %v1296_v35 = vadd.f32 %v1295_v31, %v2474_v0  ;;  %v1946_v0 = vld [vmem:[%s2689_s10] sm:$0xff]  }
 0xb58   : > { %v1292_v36 = vpop.f32.mrf.mxu0  ;;  %1803 = vmatpush3.bf16.msra.mxu1 %v1946_v0 }
 0xb59   : > { %v1304_v37 = vadd.f32 %v1668_v32, %v1296_v35 }
 0xb5a   : > { %v1799_v38 = vpop.f32.mrf.mxu0 }
 0xb5b   : > { %v1307_v39 = vsel %vm555_vm0, %v1304_v37, 0.0 }
 0xb5c   : > { %1308 = vadd.xlane.f32.xlu1 %v1307_v39 }
 0xbe5   : > { %v1309_v40 = vpop.xlane.xlu1 %1308 }
 0xbe6   : > { %v1310_v41 = vmul.f32 0.03125, %v1309_v40 }
 0xbe8   : > { %v1311_v42 = vsub.f32 %v1304_v37, %v1310_v41 }
 0xbea   : > { %v1312_v43 = vmul.f32 %v1311_v42, %v1311_v42 }
 0xbec   : > { %v1313_v44 = vsel %vm555_vm0, %v1312_v43, 0.0 }
 0xbed   : > { %1314 = vadd.xlane.f32.xlu1 %v1313_v44 }
 0xc76   : > { %v1315_v48 = vpop.xlane.xlu1 %1314 }
 0xc77   : > { %v1316_v49 = vmul.f32 0.03125, %v1315_v48 }
 0xc79   : > { %v1317_v50 = vadd.f32 1e-05, %v1316_v49 }
 0xc7b   : > { %1969 = vrsqrt.f32 %v1317_v50 }
 0xc88   : > { %v1970_v51 = vpop.eup %1969 }
 0xc89   : > { %v1319_v53 = vmul.f32 %v1970_v51, %v1311_v42 }
 0xc8b   : > { %v1326_v55 = vmul.f32 %v1669_v52, %v1319_v53 }
 0xc8d   : > { %v1333_v56 = vadd.f32 %v1670_v54, %v1326_v55 }
 0xc8f   : > { %v1334_v57 = vpack.c.bf16 %v1333_v56, %v1333_v56 }
 0xc91   : > { %1805 = vmatmul.mubr.msk.bf16.vlgmr.msra.gmra.mxu1 %vm555_vm0, %v1334_v57 }
 0xd51   : > { %v1395_v61 = vpop.f32.mrf.mxu1 }
 0xd52   : > { %v1396_v62 = vadd.f32 %v1671_v60, %v1395_v61 }
 0xd53   : > { %v1806_v63 = vpop.f32.mrf.mxu1 }
 0xd54   : > { %v1401_v1 = vmax.f32 %v1396_v62, 0.0 }
 0xd55   : > { %v1398_v2 = vpop.f32.mrf.mxu1 }
 0xd56   : > { %v1402_v3 = vpack.c.bf16 %v1401_v1, %v1401_v1 }
 0xd57   : > { %v1807_v4 = vpop.f32.mrf.mxu1 }
 0xd58   : > { %1817 = vmatmul.mubr.msk.bf16.vlgmr.msra.gmra.mxu0 %vm1442_vm4, %v1402_v3 }
 0xe18   : > { %v1480_v5 = vpop.f32.mrf.mxu0 }
 0xe19   : > { %v1481_v6 = vadd.f32 %v1675_v8, %v1480_v5 }
 0xe1a   : > { %v1818_v7 = vpop.f32.mrf.mxu0 }
 0xe1b   : > { %v1486_v9 = vadd.f32 %v1481_v6, %v1304_v37 }
 0xe1c   : > { %v1483_v10 = vpop.f32.mrf.mxu0 }
 0xe1d   : > { %1487 = vst.msk [vmem:[%s546_s28] sm:$0xff] %vm555_vm0, %v1486_v9 }
 0xe1e   : > { %v1819_v11 = vpop.f32.mrf.mxu0 }
 0xe1f   : > { %2166 = shalt.err (!%p2163_p9)
}
 0xe20   : > { %s2167_s29 = scalar_lea.hbm %s2637_s26, 128  ;;  %s2171_s24 = scalar_lea.hbm %s2693_s14, 256 }
 0xe21   : > { %p2168_p3 = scmp.ne.s32.totalorder %s2637_s26, %s2167_s29  ;;  %p2172_p6 = scmp.lt.s32.totalorder %s2637_s26, %s2693_s14 }
 0xe22   : > { %p2173_p10 = scmp.lt.s32.totalorder %s2171_s24, %s2167_s29 }
 0xe23   : > { %p2169_p5 = pnand %p2168_p3, %p2723_p8 }
 0xe24   : > { %p2174_p4 = por %p2173_p10, %p2172_p6 }
 0xe25   : > { %p2170_p12 = pneg %p2169_p5 }
 0xe27   : > { %p2175_p7 = pnand %p2174_p4, %p2170_p12 }
 0xe29   : > { %2178 = shalt.err (!%p2175_p7)
}
 0xe2a   : > { %1848 = dma.vmem_to_hbm [thread:$0]  (%p2723_p8), %s2639_s2, 128, %s2637_s26, %s1489_s17  }
 0xe2b PF: > { %s2724_s18 = sld [smem:[#allocation20_spill]]  ;;  %p1890_p11 = scmp.ge.s32.totalorder %s2229_s16, 2 }
 0xe2c   : > { %s2725_s15 = sld [smem:[#allocation24_spill]] }
 0xe31   : > { %s1514_s25 = sand.u32 1, %s2724_s18  }
 0xe32   : > { %p2726_p0 = scmp.ne.s32.totalorder %s2725_s15, 0  ;;  %s1515_s20 = scalar_lea.sflag [#allocation4], %s1514_s25 }
 0xe34   : > { %p1873_p1 = pnand %p1890_p11, %p2726_p0 }
 0xe36   : > { %p1874_p2 = pneg %p1873_p1 }
 0xe38   : > { %2212 = dma.done.wait (%p1874_p2), %s1515_s20, 128  }
 0xe39   : > { %2214 = vsyncadd (%p1874_p2), %s1515_s20, 4294967168  ;;  %s2727_s16 = sld [smem:[#allocation22_spill]]  ;;  %s2730_s29 = smov %s2221_s30 }
 0xe3a   : > { %s2728_s19 = sld [smem:[#allocation21_spill]] }
 0xe3b   : > { %s2729_s15 = sld [smem:[#allocation23_spill]] }
 0xe3f   : > { %p28_p13 = scmp.ge.s32.totalorder %s2727_s16, 4  }
 0xe40   : > { %s2731_s30 = smov %s2728_s19 }
 0xe41   :  { %30 = sbr.rel (!%p28_p13) target bundleno = 9 (0x9), region = 140 }
 0xe46   :  { %1520 = vsyncpa [#allocation3], 1 }
 0xe47   :  { %1522 = vsyncpa [#allocation3 + $0x1], 1 }
 0xe48   :  { %1523 = vsyncpa [#allocation6], 1 }
 0xe49   :  { %1524 = vsyncpa [#allocation9], 1 }
 0xe4a   :  { %1525 = vsyncpa [#allocation12], 1 }
 0xe4b   :  { %1526 = vsyncpa [#allocation4], 1 }
 0xe4c   :  { %1528 = vsyncpa [#allocation4 + $0x1], 1 }

</bundles_post_ra>
